<compile_context>
chip_gen: v7x
topology: tpu7x:2x2x1
jax: 0.10.0
libtpu: 0.0.40
codegen_flags: <defaults>
</compile_context>

<pallas_src>
import functools

import jax
import jax.numpy as jnp
from jax import lax
from jax.experimental import pallas as pl
from jax.experimental.pallas import tpu as pltpu


# Contract x (tm, tk) with w (tn, tk) over K (axis 1 of both) -> (tm, tn).
# Weight stays in the PyTorch (out_dim, input_dim) layout: no per-call HBM
# transpose pass; the MXU handles the transposed-RHS contraction natively
# (same pattern as q @ k.T in flash attention).
# TODO(synk): verify via bundle dump that no per-tile vxpose is emitted on the
# weight block; if it is, store the weight transposed (K, N) persistently.
_DN = (((1,), (1,)), ((), ()))


def _mm_kernel_inplace(x_ref, w_ref, o_ref):
    """f32 output: accumulate directly into the revisited output block."""
    @pl.when(pl.program_id(2) == 0)
    def _():
        o_ref[...] = jnp.zeros_like(o_ref)

    o_ref[...] += lax.dot_general(
        x_ref[...], w_ref[...],
        dimension_numbers=_DN,
        preferred_element_type=jnp.float32,
    )


def _mm_kernel_acc(x_ref, w_ref, o_ref, acc_ref):
    """Narrow (e.g. bf16) output: f32 VMEM accumulator, cast on the last k step."""
    @pl.when(pl.program_id(2) == 0)
    def _():
        acc_ref[...] = jnp.zeros_like(acc_ref)

    acc_ref[...] += lax.dot_general(
        x_ref[...], w_ref[...],
        dimension_numbers=_DN,
        preferred_element_type=jnp.float32,
    )

    @pl.when(pl.program_id(2) == pl.num_programs(2) - 1)
    def _():
        o_ref[...] = acc_ref[...].astype(o_ref.dtype)


def _round_up(v, m):
    return ((v + m - 1) // m) * m


def _chip_plan():
    """Per-generation (tile caps, two_tensorcores, vmem budget in bytes)."""
    kind = ""
    try:
        kind = jax.devices()[0].device_kind.lower()
    except Exception:
        pass

    vmem_cap = None
    try:
        vmem_cap = int(pltpu.get_tpu_info().vmem_capacity_bytes)
    except Exception:
        pass

    if "v7" in kind:
        # ridge ~310 FLOP/byte -> need > 512x512; 768x768 fits easily in 64 MiB.
        caps, two_tc = (768, 768, 1024), True
        vmem_cap = vmem_cap or 64 * 1024 * 1024
    elif "v6" in kind:
        # ridge ~570-700 FLOP/byte -> 1024x1024 output tiles for compute-bound.
        caps, two_tc = (1024, 1024, 1024), False
        vmem_cap = vmem_cap or 128 * 1024 * 1024
    elif "v5" in kind:
        # v5e ridge ~240 FLOP/byte -> 512x512 already compute-bound; keep small.
        caps, two_tc = (512, 512, 1024), False
        vmem_cap = vmem_cap or 128 * 1024 * 1024
    else:
        caps, two_tc = (512, 512, 1024), False
        vmem_cap = vmem_cap or 64 * 1024 * 1024

    budget = min(int(vmem_cap * 0.7), 96 * 1024 * 1024)
    return caps, two_tc, budget


def _plan_tiles(M, N, K, bytes_in, bytes_out, sublane, caps, vmem_budget, two_tc):
    """Pick (tm, tn, tk) MXU-shaped tiles that fit the VMEM budget."""
    cap_m, cap_n, cap_k = caps

    small_m = M <= 256
    if small_m:
        # Decode-like: weight-bandwidth bound.  Collapse the k-grid (whole
        # padded K per step) and keep the output tile wide / lane-dense.
        tm = _round_up(M, sublane)
        tn = min(max(cap_n, 1024), _round_up(N, 128))
        tk = _round_up(K, 128)
    else:
        tm = min(cap_m, _round_up(M, sublane))
        tn = min(cap_n, _round_up(N, 128))
        tk = min(cap_k, _round_up(K, 128))

    def footprint(tm_, tn_, tk_):
        # double-buffered x/w input blocks + double-buffered output block
        # + worst-case f32 accumulator scratch.
        return (2 * (tm_ * tk_ + tn_ * tk_) * bytes_in
                + 2 * tm_ * tn_ * bytes_out
                + tm_ * tn_ * 4)

    if small_m:
        # Prefer shrinking tn first so the k-grid stays collapsed.
        while footprint(tm, tn, tk) > vmem_budget and tn > 256:
            tn = max(256, _round_up(tn // 2, 128))

    # Keep tk >= 512 while fitting: every k-step re-reads/re-writes the (tm,tn)
    # f32 accumulator through the vld/vst slots; tiny tk makes that dominate.
    while footprint(tm, tn, tk) > vmem_budget and tk > 512:
        tk = max(512, _round_up(tk // 2, 128))
    while footprint(tm, tn, tk) > vmem_budget and (tm > 256 or tn > 256):
        if tm >= tn and tm > 256:
            tm = max(256, _round_up(tm // 2, sublane))
        else:
            tn = max(256, _round_up(tn // 2, 128))
    while footprint(tm, tn, tk) > vmem_budget and tk > 128:
        tk = max(128, _round_up(tk // 2, 128))
    while footprint(tm, tn, tk) > vmem_budget and (tm > sublane or tn > 128):
        if tm >= tn and tm > sublane:
            tm = max(sublane, _round_up(tm // 2, sublane))
        else:
            tn = max(128, _round_up(tn // 2, 128))

    # Mild anti-waste on ragged parallel edges (wasted MXU work only; ragged
    # M/N cost no extra HBM since the wrapper no longer pads them).
    while tm > 256 and (pl.cdiv(M, tm) * tm - M) * 4 > M:
        tm = max(256, _round_up(tm // 2, sublane))
    while tn > 256 and (pl.cdiv(N, tn) * tn - N) * 4 > N:
        tn = max(256, _round_up(tn // 2, 128))

    # v7x: at least 2 blocks along a parallel axis so both TensorCores work.
    if two_tc and pl.cdiv(M, tm) * pl.cdiv(N, tn) < 2:
        if M > sublane:
            tm = max(sublane, _round_up(pl.cdiv(M, 2), sublane))
        elif N > 128:
            tn = max(128, _round_up(pl.cdiv(N, 2), 128))

    return tm, tn, tk, footprint(tm, tn, tk)


@functools.partial(jax.jit, static_argnames=("compute_dtype",))
def cf_linear(x, weight, compute_dtype=None):
    """CfLinear forward.

    x:       any shape flattening to (-1, input_dim)
    weight:  (out_dim, input_dim)  -- PyTorch nn.Linear convention (NOT transposed)
    compute_dtype: optional dtype (e.g. jnp.bfloat16) for the MXU operands;
                   accumulation stays f32 and the output keeps x's dtype.
                   NOTE: for repeated calls, store the weight persistently in
                   compute_dtype so the cast below is a no-op (a per-call cast
                   is a full extra HBM pass over the weight).
    """
    out_dim, input_dim = weight.shape
    x2d = x.reshape(-1, input_dim)          # inp.view([-1, input_dim])
    M, K = x2d.shape
    N = out_dim

    out_dtype = x2d.dtype
    if compute_dtype is not None:
        x2d = x2d.astype(compute_dtype)
        weight = weight.astype(compute_dtype)

    bytes_in = jnp.dtype(x2d.dtype).itemsize
    bytes_out = jnp.dtype(out_dtype).itemsize
    sublane = max(8, 32 // bytes_in)        # 8 f32, 16 bf16, 32 int8/fp8

    caps, two_tc, vmem_budget = _chip_plan()
    tm, tn, tk, footprint = _plan_tiles(
        M, N, K, bytes_in, bytes_out, sublane, caps, vmem_budget, two_tc)

    # Only the contraction dim needs zeros for correctness (ragged M/N edge
    # blocks only contaminate masked output positions, which are dropped).
    K_pad = _round_up(K, tk)
    if K_pad != K:
        x2d = jnp.pad(x2d, ((0, 0), (0, K_pad - K)))
        weight = jnp.pad(weight, ((0, 0), (0, K_pad - K)))

    grid = (pl.cdiv(M, tm), pl.cdiv(N, tn), K_pad // tk)

    use_acc_scratch = out_dtype != jnp.float32
    kernel = _mm_kernel_acc if use_acc_scratch else _mm_kernel_inplace
    scratch = [pltpu.VMEM((tm, tn), jnp.float32)] if use_acc_scratch else []

    # Include re-streaming factors (x re-read per N-block, w re-read per M-block).
    cost = pl.CostEstimate(
        flops=2 * M * N * K_pad,
        transcendentals=0,
        bytes_accessed=(M * K_pad * grid[1] + N * K_pad * grid[0]) * bytes_in
                       + M * N * bytes_out,
    )

    # Limit = actual tile footprint + margin (robust vs. 0.7*physical).
    vmem_limit = int(min(vmem_budget, max(footprint + (16 << 20), 32 << 20)))

    out = pl.pallas_call(
        kernel,
        out_shape=jax.ShapeDtypeStruct((M, N), out_dtype),
        grid_spec=pltpu.PrefetchScalarGridSpec(
            num_scalar_prefetch=0,
            grid=grid,
            in_specs=[
                # x: (M, K) tiles
                pl.BlockSpec((tm, tk), lambda i, j, k: (i, k)),
                # weight stays in PyTorch (N, K) layout -- no host-side transpose
                pl.BlockSpec((tn, tk), lambda i, j, k: (j, k)),
            ],
            out_specs=pl.BlockSpec((tm, tn), lambda i, j, k: (i, j)),
            scratch_shapes=scratch,
        ),
        compiler_params=pltpu.CompilerParams(
            dimension_semantics=("parallel", "parallel", "arbitrary"),
            vmem_limit_bytes=vmem_limit,
        ),
        cost_estimate=cost,
    )(x2d, weight)

    return out


if __name__ == "__main__":
    # Small deterministic setup: input_dim=32, out_dim=64, input shape (2, 4, 32)
    # -> flattened to (8, 32) inside the forward, output (8, 64).
    key = jax.random.PRNGKey(0)
    k_x, k_w = jax.random.split(key)

    input_dim, out_dim = 32, 64
    x = jax.random.normal(k_x, (2, 4, input_dim), dtype=jnp.float32)

    # Deterministic "kaiming-uniform-like" init for nn.Linear weight (out_dim, input_dim).
    bound = 1.0 / (input_dim ** 0.5)
    weight = jax.random.uniform(
        k_w, (out_dim, input_dim), dtype=jnp.float32, minval=-bound, maxval=bound
    )

    # Reference (== torch semantics: x.view(-1, K) @ W.T).
    ref = x.reshape(-1, input_dim) @ weight.T

    # f32 path (exact semantics).
    out = jax.block_until_ready(cf_linear(x, weight))
    assert out.shape == (8, out_dim)
    assert jnp.allclose(out, ref, atol=1e-5, rtol=1e-5)

    # bf16-compute path (f32 accumulation) -- the MXU-rate win on all gens.
    out_bf16 = jax.block_until_ready(cf_linear(x, weight, compute_dtype=jnp.bfloat16))
    assert out_bf16.shape == (8, out_dim)
    assert jnp.allclose(out_bf16, ref, atol=5e-2, rtol=5e-2)

    print("KERNEL_OK")
</pallas_src>

<mosaic_0001>
module attributes {stable_mosaic.version = 11 : i64} {
  func.func @_mm_kernel_inplace(%arg0: i32, %arg1: i32, %arg2: i32, %arg3: memref<8x128xf32, #tpu.memory_space<vmem>>, %arg4: memref<128x128xf32, #tpu.memory_space<vmem>>, %arg5: memref<8x128xf32, #tpu.memory_space<vmem>>) attributes {dimension_semantics = [#tpu.dimension_semantics<parallel>, #tpu.dimension_semantics<parallel>, #tpu.dimension_semantics<arbitrary>], iteration_bounds = array<i64: 1, 1, 1>, scalar_prefetch = 0 : i64, scratch_operands = 0 : i64, tpu.core_type = #tpu.core_type<tc>, window_params = [{transform_indices = @transform_0, window_bounds = array<i64: 8, 128>}, {transform_indices = @transform_1, window_bounds = array<i64: 128, 128>}, {transform_indices = @transform_2, window_bounds = array<i64: 8, 128>}]} {
    %c0_i32 = arith.constant 0 : i32
    %0 = arith.cmpi eq, %arg2, %c0_i32 : i32
    %1 = arith.extui %0 : i1 to i32
    %c0_i32_0 = arith.constant 0 : i32
    %2 = arith.cmpi ne, %1, %c0_i32_0 : i32
    scf.if %2 {
      %cst_8 = arith.constant 0.000000e+00 : f32
      %9 = vector.broadcast %cst_8 : f32 to vector<8x128xf32>
      %c0_9 = arith.constant 0 : index
      %c0_10 = arith.constant 0 : index
      %10 = vector.load %arg5[%c0_9, %c0_10] : memref<8x128xf32, #tpu.memory_space<vmem>>, vector<8x128xf32>
      tpu.vector_store %arg5[%c0_9, %c0_10], %9 {strides = array<i32>} : memref<8x128xf32, #tpu.memory_space<vmem>>, vector<8x128xf32>,
    } else {
    }
    %c0 = arith.constant 0 : index
    %c0_1 = arith.constant 0 : index
    %3 = vector.load %arg5[%c0, %c0_1] : memref<8x128xf32, #tpu.memory_space<vmem>>, vector<8x128xf32>
    %c0_2 = arith.constant 0 : index
    %c0_3 = arith.constant 0 : index
    %4 = vector.load %arg3[%c0_2, %c0_3] : memref<8x128xf32, #tpu.memory_space<vmem>>, vector<8x128xf32>
    %c0_4 = arith.constant 0 : index
    %c0_5 = arith.constant 0 : index
    %5 = vector.load %arg4[%c0_4, %c0_5] : memref<128x128xf32, #tpu.memory_space<vmem>>, vector<128x128xf32>
    %cst = arith.constant dense<0.000000e+00> : vector<8x128xf32>
    %6 = tpu.matmul %4, %5, %cst {dimension_numbers = #tpu.dot_dimension_numbers<[1], [1], [0], [0], [0, 0, 1, 0], [], []>} : vector<8x128xf32>, vector<128x128xf32>, vector<8x128xf32> -> vector<8x128xf32>
    %7 = arith.addf %3, %6 : vector<8x128xf32>
    %c0_6 = arith.constant 0 : index
    %c0_7 = arith.constant 0 : index
    %8 = vector.load %arg5[%c0_6, %c0_7] : memref<8x128xf32, #tpu.memory_space<vmem>>, vector<8x128xf32>
    tpu.vector_store %arg5[%c0_6, %c0_7], %7 {strides = array<i32>} : memref<8x128xf32, #tpu.memory_space<vmem>>, vector<8x128xf32>,
    return
  }
  func.func @transform_0(%arg0: i32, %arg1: i32, %arg2: i32) -> (i32, i32) {
    %c0_i32 = arith.constant 0 : i32
    return %arg0, %arg2 : i32, i32
  }
  func.func @transform_1(%arg0: i32, %arg1: i32, %arg2: i32) -> (i32, i32) {
    %c0_i32 = arith.constant 0 : i32
    return %arg1, %arg2 : i32, i32
  }
  func.func @transform_2(%arg0: i32, %arg1: i32, %arg2: i32) -> (i32, i32) {
    %c0_i32 = arith.constant 0 : i32
    return %arg0, %arg1 : i32, i32
  }
}

</mosaic_0001>

<bundles_post_ra>
// kernel: cf_linear.1
= control target key start
LH: loop header
LB: loop body
LE: loop exit
PB: predicated region body
PF: predicated region fallthrough
CT: control target
= control target key end

     0   :  { %v225_v2 = vmov 0.0|0.0   ;;  %vm226_vm0 = vmmov 0   ;;  %v227_v4 = vmov 0.0   ;;  %s307_s0 = inlined_call_operand.vmem [shape: f32[8,128], index: 0, kind: input, shape index: {}]   ;;  %s308_s1 = inlined_call_operand.vmem [shape: f32[64,128], index: 1, kind: input, shape index: {}]   ;;  %s309_s2 = inlined_call_operand.hbm [shape: f32[8,64], index: 2, kind: output, shape index: {}]  }
   0x1   :  { %v19_v0 = vld [vmem:[%s308_s1] sm:$0xff]  ;;  %v20_v1 = vld [vmem:[%s308_s1 + $0x8] sm:$0xff]  ;;  %173 = vmatprep.subr.bf16.mxu0 %v225_v2  ;;  %170 = vmatprep.mubr.msk.f32.mxu0 %vm226_vm0, %v227_v4  ;;  %v21_v5 = vld [vmem:[%s308_s1 + $0x10] sm:$0xff] }
   0x2   :  { %v174_v3 = vpack.c.bf16 %v20_v1, %v19_v0  ;;  %v22_v6 = vld [vmem:[%s308_s1 + $0x18] sm:$0xff] }
   0x4   :  { %175 = vmatpush3.bf16.xpose.msra.mxu0 %v174_v3 }
   0x5   :  { %176 = vmatprep.subr.bf16.mxu0 %v225_v2 }
   0x6   :  { %7 = vsyncpa [#allocation3], 0  ;;  %v177_v7 = vpack.c.bf16 %v22_v6, %v21_v5  ;;  %v23_v8 = vld [vmem:[%s308_s1 + $0x20] sm:$0xff]  ;;  %v24_v9 = vld [vmem:[%s308_s1 + $0x28] sm:$0xff]  ;;  %s228_s15 = smov [#allocation2]  }
   0x7   :  { %v180_v10 = vpack.c.bf16 %v24_v9, %v23_v8  ;;  %v25_v11 = vld [vmem:[%s308_s1 + $0x30] sm:$0xff]  ;;  %v26_v12 = vld [vmem:[%s308_s1 + $0x38] sm:$0xff]  ;;  %v27_v14 = vld [vmem:[%s308_s1 + $0x40] sm:$0xff]  ;;  %s113_s16 = sshll.u32 %s228_s15, 4  ;;  %s114_s16 = int_to_ptr.vmem [resolvable:$true] %s113_s16 }
   0x8   :  { %v183_v13 = vpack.c.bf16 %v26_v12, %v25_v11  ;;  %v28_v15 = vld [vmem:[%s308_s1 + $0x48] sm:$0xff]  ;;  %v29_v17 = vld [vmem:[%s308_s1 + $0x50] sm:$0xff]  ;;  %v30_v18 = vld [vmem:[%s308_s1 + $0x58] sm:$0xff]  ;;  %s201_s17 = scalar_lea.vmem %s114_s16, 128  ;;  %p206_p1 = scmp.lt.s32.totalorder %s114_s16, %s114_s16 }
   0x9   :  { %v186_v16 = vpack.c.bf16 %v28_v15, %v27_v14  ;;  %v189_v19 = vpack.c.bf16 %v30_v18, %v29_v17  ;;  %v31_v20 = vld [vmem:[%s308_s1 + $0x60] sm:$0xff]  ;;  %v32_v21 = vld [vmem:[%s308_s1 + $0x68] sm:$0xff]  ;;  %v33_v23 = vld [vmem:[%s308_s1 + $0x70] sm:$0xff]  ;;  %p202_p0 = scmp.ne.s32.totalorder %s114_s16, %s201_s17  ;;  %p207_p2 = scmp.lt.s32.totalorder %s201_s17, %s201_s17 }
   0xa   :  { %v192_v22 = vpack.c.bf16 %v32_v21, %v31_v20  ;;  %v34_v24 = vld [vmem:[%s308_s1 + $0x78] sm:$0xff]  ;;  %v18_v26 = vld [vmem:[%s307_s0] sm:$0xff] }
   0xb   :  { %v195_v25 = vpack.c.bf16 %v34_v24, %v33_v23  ;;  %p208_p3 = por %p207_p2, %p206_p1 }
   0xc   :  { %178 = vmatpush3.bf16.xpose.msra.mxu0 %v177_v7 }
   0xd   :  { %179 = vmatprep.subr.bf16.mxu0 %v225_v2  ;;  %p209_p4 = pnand %p208_p3, %p202_p0 }
  0x14   :  { %181 = vmatpush3.bf16.xpose.msra.mxu0 %v180_v10 }
  0x15   :  { %182 = vmatprep.subr.bf16.mxu0 %v225_v2 }
  0x1c   :  { %184 = vmatpush3.bf16.xpose.msra.mxu0 %v183_v13 }
  0x1d   :  { %185 = vmatprep.subr.bf16.mxu0 %v225_v2 }
  0x24   :  { %187 = vmatpush3.bf16.xpose.msra.mxu0 %v186_v16 }
  0x25   :  { %188 = vmatprep.subr.bf16.mxu0 %v225_v2 }
  0x2c   :  { %190 = vmatpush3.bf16.xpose.msra.mxu0 %v189_v19 }
  0x2d   :  { %191 = vmatprep.subr.bf16.mxu0 %v225_v2 }
  0x34   :  { %193 = vmatpush3.bf16.xpose.msra.mxu0 %v192_v22 }
  0x35   :  { %194 = vmatprep.subr.bf16.mxu0 %v225_v2 }
  0x3c   :  { %196 = vmatpush3.bf16.xpose.msra.mxu0 %v195_v25 }
  0x43   :  { %171 = vmatmul.mubr.f32.vlgmr.msra.gmra.mrb[0].mxu0 %v18_v26 }
 0x116   :  { %v101_v27 = vpop.f32.mrb[0].mxu0 }
 0x117   :  { %v172_v28 = vpop.f32.mrb[1].mxu0  ;;  %106 = vst [vmem:[#allocation2] sm:$0xff] %v101_v27 }
 0x118   :  { %212 = shalt.err (!%p209_p4)
}
 0x119   :  { %s213_s19 = scalar_lea.hbm %s309_s2, 128 }
 0x11a   :  { %p214_p5 = scmp.ne.s32.totalorder %s309_s2, %s213_s19  ;;  %p217_p6 = scmp.lt.u32.totalorder %s213_s19, %s309_s2 }
 0x11c   :  { %p219_p7 = pnand %p217_p6, %p214_p5 }
 0x11e   :  { %222 = shalt.err (!%p219_p7)
}
 0x11f   :  { %116 = dma.vmem_to_hbm [thread:$0]  %s114_s16, 128, %s309_s2, [#allocation3]  }
 0x120   :  { %223 = dma.done.wait [#allocation3], 128  }
 0x121   :  { %224 = vsyncadd [#allocation3], 4294967168 }
 0x122   :  { %120 = vsyncpa [#allocation3], 1 }

</bundles_post_ra>
